<compile_context>
chip_gen: v6e
topology: v6e:2x2x1
jax: 0.10.0
libtpu: 0.0.40
codegen_flags: <defaults>
</compile_context>

<pallas_src>
import jax
import jax.numpy as jnp
from jax.experimental import pallas as pl
from jax.experimental.pallas import tpu as pltpu


def _rrwp_node_encoder_kernel(rrwp_ref, w_ref, x_ref, o_ref):
    # rrwp_ref: (TR, EMB*F)   w_ref: (EMB*F, OUT*F)   x_ref/o_ref: (TR, OUT*F)
    fc = jnp.dot(rrwp_ref[...], w_ref[...], preferred_element_type=jnp.float32)
    o_ref[...] = (x_ref[...].astype(jnp.float32) + fc).astype(o_ref.dtype)


def make_folded_weight(weight, fold):
    """weight: [out_dim, emb_dim] (torch Linear layout).

    Returns the block-diagonal folded weight [emb_dim*fold, out_dim*fold]
    (= kron(I_fold, W^T)).  Constant per layer; build it once, outside the
    per-step call path, and reuse.
    """
    return jnp.kron(jnp.eye(fold, dtype=weight.dtype), weight.T)


def rrwp_linear_node_encoder(rrwp, weight, x, *, fold=4, tile_rows=2048,
                             folded_weight=None):
    """rrwp: [N, emb_dim], weight: [out_dim, emb_dim] (torch Linear layout),
    x: [N, out_dim].  Returns x + rrwp @ weight.T  (shape [N, out_dim])."""
    n, emb_dim = rrwp.shape
    out_dim, emb_dim_w = weight.shape
    assert emb_dim == emb_dim_w
    assert x.shape == (n, out_dim)

    # Pad node count to a multiple of fold*8 so folded rows are sublane
    # aligned; padded rows are zero and sliced off at the end.
    pad_to = fold * 8
    n_pad = ((n + pad_to - 1) // pad_to) * pad_to
    if n_pad != n:
        rrwp = jnp.pad(rrwp, ((0, n_pad - n), (0, 0)))
        x = jnp.pad(x, ((0, n_pad - n), (0, 0)))
    nf = n_pad // fold

    # Lane-dense folded views: row j holds nodes [j*fold, (j+1)*fold).
    rrwp_f = rrwp.reshape(nf, emb_dim * fold)
    x_f = x.reshape(nf, out_dim * fold)
    w_bd = folded_weight if folded_weight is not None else make_folded_weight(
        weight, fold)
    assert w_bd.shape == (emb_dim * fold, out_dim * fold)

    # Node-tile size (in folded rows): large to amortize grid-step overhead,
    # clamped to the actual row count, multiple of 8.
    tile_rows = max(8, (tile_rows // 8) * 8)
    tr = min(tile_rows, nf)
    grid = (pl.cdiv(nf, tr),)

    dsize = jnp.dtype(x.dtype).itemsize
    cost = pl.CostEstimate(
        flops=2 * n_pad * emb_dim * out_dim,
        transcendentals=0,
        bytes_accessed=n_pad * (emb_dim + 2 * out_dim) * dsize,
    )

    out_f = pl.pallas_call(
        _rrwp_node_encoder_kernel,
        out_shape=jax.ShapeDtypeStruct((nf, out_dim * fold), x.dtype),
        grid_spec=pltpu.PrefetchScalarGridSpec(
            num_scalar_prefetch=0,
            grid=grid,
            in_specs=[
                # folded rrwp tile
                pl.BlockSpec((tr, emb_dim * fold), lambda i: (i, 0)),
                # full block-diagonal weight (constant index_map -> resident)
                pl.BlockSpec((emb_dim * fold, out_dim * fold),
                             lambda i: (0, 0)),
                # folded x tile
                pl.BlockSpec((tr, out_dim * fold), lambda i: (i, 0)),
            ],
            out_specs=pl.BlockSpec((tr, out_dim * fold), lambda i: (i, 0)),
        ),
        compiler_params=pltpu.CompilerParams(
            dimension_semantics=("parallel",)),
        cost_estimate=cost,
    )(rrwp_f, w_bd, x_f)

    out = out_f.reshape(n_pad, out_dim)
    return out[:n] if n_pad != n else out


def _xavier_uniform(key, shape):
    # torch.nn.init.xavier_uniform_ for a Linear weight [out_dim, in_dim]
    fan_out, fan_in = shape
    limit = (6.0 / (fan_in + fan_out)) ** 0.5
    return jax.random.uniform(key, shape, jnp.float32, -limit, limit)


if __name__ == "__main__":
    # Small, module-consistent shapes:
    #   ksteps (emb_dim) = 32, out_dim = 64, N (nodes) = 256
    N, EMB_DIM, OUT_DIM = 256, 32, 64

    key = jax.random.PRNGKey(0)
    k_w, k_rrwp, k_x = jax.random.split(key, 3)

    weight = _xavier_uniform(k_w, (OUT_DIM, EMB_DIM))            # fc.weight
    rrwp = jax.random.normal(k_rrwp, (N, EMB_DIM), jnp.float32)  # batch['rrwp']
    x = jax.random.normal(k_x, (N, OUT_DIM), jnp.float32)        # batch.x

    # Folded weight built once per layer (constant), reused across calls.
    w_bd = make_folded_weight(weight, fold=4)

    out = rrwp_linear_node_encoder(rrwp, weight, x, fold=4, folded_weight=w_bd)
    out = jax.block_until_ready(out)

    # Reference check in plain JAX (Linear + residual add).
    ref = x + rrwp @ weight.T
    assert out.shape == (N, OUT_DIM)
    assert jnp.allclose(out, ref, atol=1e-5, rtol=1e-5)

    # Ragged node count (exercises the padding / slicing path).
    N2 = 250
    out2 = rrwp_linear_node_encoder(rrwp[:N2], weight, x[:N2], fold=4,
                                    folded_weight=w_bd)
    out2 = jax.block_until_ready(out2)
    ref2 = x[:N2] + rrwp[:N2] @ weight.T
    assert out2.shape == (N2, OUT_DIM)
    assert jnp.allclose(out2, ref2, atol=1e-5, rtol=1e-5)

    print("KERNEL_OK")
</pallas_src>

<mosaic_0001>
module attributes {stable_mosaic.version = 11 : i64} {
  func.func @_rrwp_node_encoder_kernel(%arg0: i32, %arg1: memref<64x128xf32, #tpu.memory_space<vmem>>, %arg2: memref<128x256xf32, #tpu.memory_space<vmem>>, %arg3: memref<64x256xf32, #tpu.memory_space<vmem>>, %arg4: memref<64x256xf32, #tpu.memory_space<vmem>>) attributes {dimension_semantics = [#tpu.dimension_semantics<parallel>], iteration_bounds = array<i64: 1>, scalar_prefetch = 0 : i64, scratch_operands = 0 : i64, tpu.core_type = #tpu.core_type<tc>, window_params = [{transform_indices = @transform_0, window_bounds = array<i64: 64, 128>}, {pipeline_mode = #tpu.pipeline_mode<synchronous>, transform_indices = @transform_1, window_bounds = array<i64: 128, 256>}, {transform_indices = @transform_2, window_bounds = array<i64: 64, 256>}, {transform_indices = @transform_3, window_bounds = array<i64: 64, 256>}]} {
    %c0 = arith.constant 0 : index
    %c0_0 = arith.constant 0 : index
    %0 = vector.load %arg1[%c0, %c0_0] : memref<64x128xf32, #tpu.memory_space<vmem>>, vector<64x128xf32>
    %c0_1 = arith.constant 0 : index
    %c0_2 = arith.constant 0 : index
    %1 = vector.load %arg2[%c0_1, %c0_2] : memref<128x256xf32, #tpu.memory_space<vmem>>, vector<128x256xf32>
    %cst = arith.constant dense<0.000000e+00> : vector<64x256xf32>
    %2 = tpu.matmul %0, %1, %cst {dimension_numbers = #tpu.dot_dimension_numbers<[1], [0], [0], [1], [0, 0, 1, 1], [], []>} : vector<64x128xf32>, vector<128x256xf32>, vector<64x256xf32> -> vector<64x256xf32>
    %c0_3 = arith.constant 0 : index
    %c0_4 = arith.constant 0 : index
    %3 = vector.load %arg3[%c0_3, %c0_4] : memref<64x256xf32, #tpu.memory_space<vmem>>, vector<64x256xf32>
    %4 = arith.addf %3, %2 : vector<64x256xf32>
    %c0_5 = arith.constant 0 : index
    %c0_6 = arith.constant 0 : index
    %5 = vector.load %arg4[%c0_5, %c0_6] : memref<64x256xf32, #tpu.memory_space<vmem>>, vector<64x256xf32>
    tpu.vector_store %arg4[%c0_5, %c0_6], %4 {strides = array<i32>} : memref<64x256xf32, #tpu.memory_space<vmem>>, vector<64x256xf32>,
    return
  }
  func.func @transform_0(%arg0: i32) -> (i32, i32) {
    %c0_i32 = arith.constant 0 : i32
    %c0_i32_0 = arith.constant 0 : i32
    return %arg0, %c0_i32 : i32, i32
  }
  func.func @transform_1(%arg0: i32) -> (i32, i32) {
    %c0_i32 = arith.constant 0 : i32
    %c0_i32_0 = arith.constant 0 : i32
    %c0_i32_1 = arith.constant 0 : i32
    return %c0_i32, %c0_i32_0 : i32, i32
  }
  func.func @transform_2(%arg0: i32) -> (i32, i32) {
    %c0_i32 = arith.constant 0 : i32
    %c0_i32_0 = arith.constant 0 : i32
    return %arg0, %c0_i32 : i32, i32
  }
  func.func @transform_3(%arg0: i32) -> (i32, i32) {
    %c0_i32 = arith.constant 0 : i32
    %c0_i32_0 = arith.constant 0 : i32
    return %arg0, %c0_i32 : i32, i32
  }
}

</mosaic_0001>

<bundles_post_ra>
// kernel: tpu_custom_call.1
= control target key start
LH: loop header
LB: loop body
LE: loop exit
PB: predicated region body
PF: predicated region fallthrough
CT: control target
= control target key end

     0   :  { %8 = vsyncpa [#allocation3], 0  ;;  %s460_s0 = inlined_call_operand.hbm [shape: f32[64,128], index: 0, kind: input, shape index: {}]   ;;  %s461_s1 = inlined_call_operand.hbm [shape: f32[128,256], index: 1, kind: input, shape index: {}]   ;;  %s462_s2 = inlined_call_operand.hbm [shape: f32[64,256], index: 2, kind: input, shape index: {}]   ;;  %s463_s3 = inlined_call_operand.hbm [shape: f32[64,256], index: 3, kind: output, shape index: {}]  }
   0x1   :  { %9 = vsyncpa [#allocation6], 0 }
   0x2   :  { %10 = vsyncpa [#allocation4], 0  ;;  %s402_s12 = smov [#allocation5]  }
   0x3   :  { %s28_s13 = sshll.u32 %s402_s12, 4  ;;  %s29_s13 = int_to_ptr.vmem [resolvable:$true] %s28_s13 }
   0x4   :  { %s324_s14 = scalar_lea.vmem %s29_s13, 4096  ;;  %p329_p1 = scmp.lt.s32.totalorder %s29_s13, %s29_s13 }
   0x5   :  { %p325_p0 = scmp.ne.s32.totalorder %s29_s13, %s324_s14  ;;  %p330_p2 = scmp.lt.s32.totalorder %s324_s14, %s324_s14 }
   0x7   :  { %p331_p3 = por %p330_p2, %p329_p1 }
   0x9   :  { %p332_p4 = pnand %p331_p3, %p325_p0 }
   0xb   :  { %335 = shalt.err (!%p332_p4)
}
   0xc   :  { %s403_s15 = smov 256   ;;  %s404_s16 = smov 16  }
   0xd   :  { %34 = dma.hbm_to_vmem [thread:$0]  %s461_s1, 4096, %s29_s13, [#allocation6], %s403_s15, %s403_s15, %s404_s16  }
   0xe   :  { %s405_s19 = smov [#allocation2]  }
   0xf   :  { %s16_s20 = sshll.u32 %s405_s19, 4  ;;  %s17_s20 = int_to_ptr.vmem [resolvable:$true] %s16_s20 }
  0x10   :  { %s344_s21 = scalar_lea.vmem %s17_s20, 1024  ;;  %p349_p6 = scmp.lt.s32.totalorder %s17_s20, %s17_s20 }
  0x11   :  { %p345_p5 = scmp.ne.s32.totalorder %s17_s20, %s344_s21  ;;  %p350_p7 = scmp.lt.s32.totalorder %s344_s21, %s344_s21 }
  0x13   :  { %p351_p8 = por %p350_p7, %p349_p6 }
  0x15   :  { %p352_p9 = pnand %p351_p8, %p345_p5 }
  0x17   :  { %355 = shalt.err (!%p352_p9)
}
  0x18   :  { %s406_s22 = smov 128   ;;  %s407_s23 = smov 8  }
  0x19   :  { %22 = dma.hbm_to_vmem [thread:$0]  %s460_s0, 1024, %s17_s20, [#allocation3], %s406_s22, %s406_s22, %s407_s23  }
  0x1a   :  { %s408_s26 = smov [#allocation7]  }
  0x1b   :  { %s40_s27 = sshll.u32 %s408_s26, 4  ;;  %s41_s27 = int_to_ptr.vmem [resolvable:$true] %s40_s27 }
  0x1c   :  { %s364_s1 = scalar_lea.vmem %s41_s27, 2048  ;;  %p369_p11 = scmp.lt.s32.totalorder %s41_s27, %s41_s27 }
  0x1d   :  { %p365_p10 = scmp.ne.s32.totalorder %s41_s27, %s364_s1  ;;  %p370_p12 = scmp.lt.s32.totalorder %s364_s1, %s364_s1 }
  0x1f   :  { %p371_p13 = por %p370_p12, %p369_p11 }
  0x21   :  { %p372_p0 = pnand %p371_p13, %p365_p10 }
  0x23   :  { %375 = shalt.err (!%p372_p0)
}
  0x24   :  { %46 = dma.hbm_to_vmem [thread:$0]  %s462_s2, 2048, %s41_s27, [#allocation6], %s403_s15, %s403_s15, %s404_s16  }
  0x25   :  { %396 = dma.done.wait [#allocation3], 1024  }
  0x26   :  { %397 = vsyncadd [#allocation3], 4294966272 }
  0x27   :  { %398 = dma.done.wait [#allocation6], 6144  }
  0x28   :  { %399 = vsyncadd [#allocation6], 4294961152  ;;  %v409_v0 = vmov 0.0   ;;  %v95_v1 = vld [vmem:[#allocation5 + $0xf8] sm:$0xff]  ;;  %v94_v2 = vld [vmem:[#allocation5 + $0xf0] sm:$0xff]  ;;  %s410_s0 = smov [#allocation8]  }
  0x29   :  { %160 = vmatprep.mubr.f32.mxu0 %v409_v0  ;;  %184 = vmatprep.mubr.f32.mxu1 %v409_v0  ;;  %v93_v3 = vld [vmem:[#allocation5 + $0xe8] sm:$0xff]  ;;  %v92_v4 = vld [vmem:[#allocation5 + $0xe0] sm:$0xff]  ;;  %v91_v5 = vld [vmem:[#allocation5 + $0xd8] sm:$0xff]  ;;  %s262_s2 = sshll.u32 %s410_s0, 4  ;;  %s263_s2 = int_to_ptr.vmem [resolvable:$true] %s262_s2 }
  0x2a   :  { %96 = vmatprep.subr.mxu0 %v95_v1  ;;  %275 = vmatprep.subr.mxu1 %v95_v1  ;;  %v90_v6 = vld [vmem:[#allocation5 + $0xd0] sm:$0xff]  ;;  %v89_v7 = vld [vmem:[#allocation5 + $0xc8] sm:$0xff]  ;;  %v88_v8 = vld [vmem:[#allocation5 + $0xc0] sm:$0xff]  ;;  %s376_s30 = scalar_lea.vmem %s263_s2, 2048  ;;  %p381_p2 = scmp.lt.s32.totalorder %s263_s2, %s263_s2 }
  0x2b   :  { %97 = vmatpush1.msra.mxu0 %v94_v2  ;;  %291 = vmatpush1.msra.mxu1 %v94_v2  ;;  %v87_v9 = vld [vmem:[#allocation5 + $0xb8] sm:$0xff]  ;;  %v86_v10 = vld [vmem:[#allocation5 + $0xb0] sm:$0xff]  ;;  %v85_v11 = vld [vmem:[#allocation5 + $0xa8] sm:$0xff]  ;;  %p377_p1 = scmp.ne.s32.totalorder %s263_s2, %s376_s30  ;;  %p382_p3 = scmp.lt.s32.totalorder %s376_s30, %s376_s30 }
  0x2c   :  { %98 = vmatprep.subr.mxu0 %v93_v3  ;;  %276 = vmatprep.subr.mxu1 %v93_v3  ;;  %v84_v12 = vld [vmem:[#allocation5 + $0xa0] sm:$0xff]  ;;  %v83_v13 = vld [vmem:[#allocation5 + $0x98] sm:$0xff]  ;;  %v82_v14 = vld [vmem:[#allocation5 + $0x90] sm:$0xff] }
  0x2d   :  { %99 = vmatpush1.msra.mxu0 %v92_v4  ;;  %292 = vmatpush1.msra.mxu1 %v92_v4  ;;  %v81_v15 = vld [vmem:[#allocation5 + $0x88] sm:$0xff]  ;;  %v80_v16 = vld [vmem:[#allocation5 + $0x80] sm:$0xff]  ;;  %v79_v17 = vld [vmem:[#allocation5 + $0x78] sm:$0xff]  ;;  %p383_p4 = por %p382_p3, %p381_p2 }
  0x2e   :  { %100 = vmatprep.subr.mxu0 %v91_v5  ;;  %277 = vmatprep.subr.mxu1 %v91_v5  ;;  %v78_v18 = vld [vmem:[#allocation5 + $0x70] sm:$0xff]  ;;  %v77_v19 = vld [vmem:[#allocation5 + $0x68] sm:$0xff]  ;;  %v76_v20 = vld [vmem:[#allocation5 + $0x60] sm:$0xff] }
  0x2f   :  { %101 = vmatpush1.msra.mxu0 %v90_v6  ;;  %293 = vmatpush1.msra.mxu1 %v90_v6  ;;  %v75_v21 = vld [vmem:[#allocation5 + $0x58] sm:$0xff]  ;;  %v74_v22 = vld [vmem:[#allocation5 + $0x50] sm:$0xff]  ;;  %v73_v23 = vld [vmem:[#allocation5 + $0x48] sm:$0xff]  ;;  %p384_p5 = pnand %p383_p4, %p377_p1 }
  0x30   :  { %102 = vmatprep.subr.mxu0 %v89_v7  ;;  %278 = vmatprep.subr.mxu1 %v89_v7  ;;  %v72_v24 = vld [vmem:[#allocation5 + $0x40] sm:$0xff]  ;;  %v71_v25 = vld [vmem:[#allocation5 + $0x38] sm:$0xff]  ;;  %v70_v26 = vld [vmem:[#allocation5 + $0x30] sm:$0xff] }
  0x31   :  { %103 = vmatpush1.msra.mxu0 %v88_v8  ;;  %294 = vmatpush1.msra.mxu1 %v88_v8  ;;  %v69_v27 = vld [vmem:[#allocation5 + $0x28] sm:$0xff]  ;;  %v68_v28 = vld [vmem:[#allocation5 + $0x20] sm:$0xff]  ;;  %v67_v29 = vld [vmem:[#allocation5 + $0x18] sm:$0xff] }
  0x32   :  { %104 = vmatprep.subr.mxu0 %v87_v9  ;;  %279 = vmatprep.subr.mxu1 %v87_v9  ;;  %v66_v30 = vld [vmem:[#allocation5 + $0x10] sm:$0xff]  ;;  %v65_v31 = vld [vmem:[#allocation5 + $0x8] sm:$0xff]  ;;  %v64_v32 = vld [vmem:[#allocation5] sm:$0xff] }
  0x33   :  { %105 = vmatpush1.msra.mxu0 %v86_v10  ;;  %295 = vmatpush1.msra.mxu1 %v86_v10  ;;  %v56_v33 = vld [vmem:[#allocation2] sm:$0xff]  ;;  %v57_v35 = vld [vmem:[#allocation2 + $0x8] sm:$0xff]  ;;  %v58_v37 = vld [vmem:[#allocation2 + $0x10] sm:$0xff] }
  0x34   :  { %106 = vmatprep.subr.mxu0 %v85_v11  ;;  %280 = vmatprep.subr.mxu1 %v85_v11  ;;  %v60_v34 = vld [vmem:[#allocation2 + $0x20] sm:$0xff]  ;;  %v61_v36 = vld [vmem:[#allocation2 + $0x28] sm:$0xff]  ;;  %v62_v38 = vld [vmem:[#allocation2 + $0x30] sm:$0xff] }
  0x35   :  { %107 = vmatpush1.msra.mxu0 %v84_v12  ;;  %296 = vmatpush1.msra.mxu1 %v84_v12  ;;  %v59_v39 = vld [vmem:[#allocation2 + $0x18] sm:$0xff]  ;;  %v209_v41 = vld [vmem:[#allocation7] sm:$0xff]  ;;  %v210_v45 = vld [vmem:[#allocation7 + $0x8] sm:$0xff] }
  0x36   :  { %108 = vmatprep.subr.mxu0 %v83_v13  ;;  %281 = vmatprep.subr.mxu1 %v83_v13  ;;  %v63_v40 = vld [vmem:[#allocation2 + $0x38] sm:$0xff]  ;;  %v217_v42 = vld [vmem:[#allocation7 + $0x40] sm:$0xff]  ;;  %v218_v46 = vld [vmem:[#allocation7 + $0x48] sm:$0xff] }
  0x37   :  { %109 = vmatpush1.msra.mxu0 %v82_v14  ;;  %297 = vmatpush1.msra.mxu1 %v82_v14  ;;  %v211_v51 = vld [vmem:[#allocation7 + $0x10] sm:$0xff]  ;;  %v212_v57 = vld [vmem:[#allocation7 + $0x18] sm:$0xff]  ;;  %v213_v63 = vld [vmem:[#allocation7 + $0x20] sm:$0xff] }
  0x38   :  { %110 = vmatprep.subr.mxu0 %v81_v15  ;;  %282 = vmatprep.subr.mxu1 %v81_v15  ;;  %v219_v52 = vld [vmem:[#allocation7 + $0x50] sm:$0xff]  ;;  %v220_v58 = vld [vmem:[#allocation7 + $0x58] sm:$0xff]  ;;  %v214_v5 = vld [vmem:[#allocation7 + $0x28] sm:$0xff] }
  0x39   :  { %111 = vmatpush1.msra.mxu0 %v80_v16  ;;  %298 = vmatpush1.msra.mxu1 %v80_v16  ;;  %v222_v6 = vld [vmem:[#allocation7 + $0x68] sm:$0xff]  ;;  %v215_v11 = vld [vmem:[#allocation7 + $0x30] sm:$0xff] }
  0x3a   :  { %112 = vmatprep.subr.mxu0 %v79_v17  ;;  %283 = vmatprep.subr.mxu1 %v79_v17  ;;  %v223_v12 = vld [vmem:[#allocation7 + $0x70] sm:$0xff]  ;;  %v216_v17 = vld [vmem:[#allocation7 + $0x38] sm:$0xff] }
  0x3b   :  { %113 = vmatpush1.msra.mxu0 %v78_v18  ;;  %299 = vmatpush1.msra.mxu1 %v78_v18  ;;  %v224_v18 = vld [vmem:[#allocation7 + $0x78] sm:$0xff] }
  0x3c   :  { %114 = vmatprep.subr.mxu0 %v77_v19  ;;  %284 = vmatprep.subr.mxu1 %v77_v19 }
  0x3d   :  { %115 = vmatpush1.msra.mxu0 %v76_v20  ;;  %300 = vmatpush1.msra.mxu1 %v76_v20 }
  0x3e   :  { %116 = vmatprep.subr.mxu0 %v75_v21  ;;  %285 = vmatprep.subr.mxu1 %v75_v21 }
  0x3f   :  { %117 = vmatpush1.msra.mxu0 %v74_v22  ;;  %301 = vmatpush1.msra.mxu1 %v74_v22 }
  0x40   :  { %118 = vmatprep.subr.mxu0 %v73_v23  ;;  %286 = vmatprep.subr.mxu1 %v73_v23 }
  0x41   :  { %119 = vmatpush1.msra.mxu0 %v72_v24  ;;  %302 = vmatpush1.msra.mxu1 %v72_v24 }
  0x42   :  { %120 = vmatprep.subr.mxu0 %v71_v25  ;;  %287 = vmatprep.subr.mxu1 %v71_v25 }
  0x43   :  { %121 = vmatpush1.msra.mxu0 %v70_v26  ;;  %303 = vmatpush1.msra.mxu1 %v70_v26 }
  0x44   :  { %122 = vmatprep.subr.mxu0 %v69_v27  ;;  %288 = vmatprep.subr.mxu1 %v69_v27 }
  0x45   :  { %123 = vmatpush1.msra.mxu0 %v68_v28  ;;  %304 = vmatpush1.msra.mxu1 %v68_v28 }
  0x46   :  { %124 = vmatprep.subr.mxu0 %v67_v29  ;;  %289 = vmatprep.subr.mxu1 %v67_v29 }
  0x47   :  { %125 = vmatpush1.msra.mxu0 %v66_v30  ;;  %305 = vmatpush1.msra.mxu1 %v66_v30 }
  0x48   :  { %126 = vmatprep.subr.mxu0 %v65_v31  ;;  %290 = vmatprep.subr.mxu1 %v65_v31 }
  0x49   :  { %127 = vmatpush1.msra.mxu0 %v64_v32  ;;  %306 = vmatpush1.msra.mxu1 %v64_v32 }
  0x4a   :  { %161 = vmatmul.mubr.f32.vlgmr.msra.gmra.mxu0 %v56_v33  ;;  %185 = vmatmul.mubr.f32.vlgmr.msra.gmra.mxu1 %v60_v34 }
  0x4b   :  { %166 = vmatprep.mubr.f32.mxu0 %v409_v0  ;;  %190 = vmatprep.mubr.f32.mxu1 %v409_v0 }
  0x4e   :  { %167 = vmatmul.mubr.f32.gmra.mxu0 %v57_v35  ;;  %191 = vmatmul.mubr.f32.gmra.mxu1 %v61_v36 }
  0x4f   :  { %172 = vmatprep.mubr.f32.mxu0 %v409_v0  ;;  %196 = vmatprep.mubr.f32.mxu1 %v409_v0 }
  0x52   :  { %173 = vmatmul.mubr.f32.gmra.mxu0 %v58_v37  ;;  %197 = vmatmul.mubr.f32.gmra.mxu1 %v62_v38 }
  0x53   :  { %178 = vmatprep.mubr.f32.mxu0 %v409_v0  ;;  %202 = vmatprep.mubr.f32.mxu1 %v409_v0  ;;  %v221_v0 = vld [vmem:[#allocation7 + $0x60] sm:$0xff] }
  0x56   :  { %179 = vmatmul.mubr.f32.gmra.mxu0 %v59_v39  ;;  %203 = vmatmul.mubr.f32.gmra.mxu1 %v63_v40 }
 0x10a   :  { %v162_v43 = vpop.f32.mrf.mxu0  ;;  %v186_v44 = vpop.f32.mrf.mxu1 }
 0x10b   :  { %v225_v47 = vadd.f32 %v209_v41, %v162_v43  ;;  %v233_v48 = vadd.f32 %v217_v42, %v186_v44 }
 0x10c   :  { %v164_v49 = vpop.f32.mrf.mxu0  ;;  %v188_v50 = vpop.f32.mrf.mxu1 }
 0x10d   :  { %241 = vst [vmem:[#allocation8] sm:$0xff] %v225_v47  ;;  %249 = vst [vmem:[#allocation8 + $0x40] sm:$0xff] %v233_v48  ;;  %v226_v53 = vadd.f32 %v210_v45, %v164_v49  ;;  %v234_v54 = vadd.f32 %v218_v46, %v188_v50 }
 0x10e   :  { %v168_v55 = vpop.f32.mrf.mxu0  ;;  %v192_v56 = vpop.f32.mrf.mxu1 }
 0x10f   :  { %242 = vst [vmem:[#allocation8 + $0x8] sm:$0xff] %v226_v53  ;;  %250 = vst [vmem:[#allocation8 + $0x48] sm:$0xff] %v234_v54  ;;  %v227_v59 = vadd.f32 %v211_v51, %v168_v55  ;;  %v235_v60 = vadd.f32 %v219_v52, %v192_v56 }
 0x110   :  { %v170_v61 = vpop.f32.mrf.mxu0  ;;  %v194_v62 = vpop.f32.mrf.mxu1 }
 0x111   :  { %243 = vst [vmem:[#allocation8 + $0x10] sm:$0xff] %v227_v59  ;;  %251 = vst [vmem:[#allocation8 + $0x50] sm:$0xff] %v235_v60  ;;  %v228_v1 = vadd.f32 %v212_v57, %v170_v61  ;;  %v236_v2 = vadd.f32 %v220_v58, %v194_v62 }
 0x112   :  { %v174_v3 = vpop.f32.mrf.mxu0  ;;  %v198_v4 = vpop.f32.mrf.mxu1 }
 0x113   :  { %244 = vst [vmem:[#allocation8 + $0x18] sm:$0xff] %v228_v1  ;;  %252 = vst [vmem:[#allocation8 + $0x58] sm:$0xff] %v236_v2  ;;  %v229_v7 = vadd.f32 %v213_v63, %v174_v3  ;;  %v237_v8 = vadd.f32 %v221_v0, %v198_v4 }
 0x114   :  { %v176_v9 = vpop.f32.mrf.mxu0  ;;  %v200_v10 = vpop.f32.mrf.mxu1 }
 0x115   :  { %245 = vst [vmem:[#allocation8 + $0x20] sm:$0xff] %v229_v7  ;;  %253 = vst [vmem:[#allocation8 + $0x60] sm:$0xff] %v237_v8  ;;  %v230_v13 = vadd.f32 %v214_v5, %v176_v9  ;;  %v238_v14 = vadd.f32 %v222_v6, %v200_v10 }
 0x116   :  { %v180_v15 = vpop.f32.mrf.mxu0  ;;  %v204_v16 = vpop.f32.mrf.mxu1 }
 0x117   :  { %246 = vst [vmem:[#allocation8 + $0x28] sm:$0xff] %v230_v13  ;;  %254 = vst [vmem:[#allocation8 + $0x68] sm:$0xff] %v238_v14  ;;  %v231_v19 = vadd.f32 %v215_v11, %v180_v15  ;;  %v239_v20 = vadd.f32 %v223_v12, %v204_v16 }
 0x118   :  { %v182_v21 = vpop.f32.mrf.mxu0  ;;  %v206_v22 = vpop.f32.mrf.mxu1 }
 0x119   :  { %247 = vst [vmem:[#allocation8 + $0x30] sm:$0xff] %v231_v19  ;;  %255 = vst [vmem:[#allocation8 + $0x70] sm:$0xff] %v239_v20  ;;  %v232_v23 = vadd.f32 %v216_v17, %v182_v21  ;;  %v240_v24 = vadd.f32 %v224_v18, %v206_v22 }
 0x11b   :  { %248 = vst [vmem:[#allocation8 + $0x38] sm:$0xff] %v232_v23  ;;  %256 = vst [vmem:[#allocation8 + $0x78] sm:$0xff] %v240_v24 }
 0x11c   :  { %387 = shalt.err (!%p384_p5)
}
 0x11d   :  { %268 = dma.vmem_to_hbm [thread:$0]  %s263_s2, 2048, %s463_s3, [#allocation4], %s403_s15, %s403_s15, %s404_s16  }
 0x11e   :  { %400 = dma.done.wait [#allocation4], 2048  }
 0x11f   :  { %401 = vsyncadd [#allocation4], 4294965248 }
 0x120   :  { %272 = vsyncpa [#allocation3], 1 }
 0x121   :  { %273 = vsyncpa [#allocation6], 1 }
 0x122   :  { %274 = vsyncpa [#allocation4], 1 }

</bundles_post_ra>
